<compile_context>
chip_gen: v7x
topology: tpu7x:2x2x1
jax: 0.10.0
libtpu: 0.0.40
codegen_flags: <defaults>
</compile_context>

<pallas_src>
import functools

import jax
import jax.numpy as jnp
from jax import lax
from jax.experimental import pallas as pl
from jax.experimental.pallas import tpu as pltpu  # noqa: F401  (TPU backend / memory spaces)


LANE = 128      # vreg lane width  (last-dim alignment)
SUBLANE = 8     # vreg sublane width (second-to-last alignment)


def _round_up(x: int, m: int) -> int:
    return ((x + m - 1) // m) * m


def _pad_bias(b: jax.Array, npad: int) -> jax.Array:
    """Bias as a (1, npad) f32 row (epilogue stays f32; v5e-safe)."""
    return jnp.zeros((1, npad), jnp.float32).at[:, : b.shape[0]].set(b.astype(jnp.float32))


# ---------------------------------------------------------------------------
# Single fused kernel: (x, idx_c...) -> logits, all params VMEM-resident.
# ---------------------------------------------------------------------------
def _fused_tabmlp_kernel(*refs, n_cats: int, n_layers: int, compute_dtype):
    """refs layout (all 2-D, full-array VMEM blocks):

      refs[0]                              x        (B, x_dim)
      refs[1          : 1+n_cats]          idx_c    (B, 1) int32
      refs[1+n_cats   : 1+2*n_cats]        fold_c   (Vp_c, N0p)   = pad(T_c @ W0_slice), compute_dtype
      refs[1+2*n_cats : 1+2*n_cats+2*n_layers]  (W_l, b_l) pairs, compute_dtype / f32
      refs[-1]                             out      (B, Nout_p)   f32 (lane-dense)
    """
    x_ref = refs[0]
    idx_refs = refs[1 : 1 + n_cats]
    fold_refs = refs[1 + n_cats : 1 + 2 * n_cats]
    wb_refs = refs[1 + 2 * n_cats : 1 + 2 * n_cats + 2 * n_layers]
    o_ref = refs[-1]

    B = x_ref.shape[0]

    # ---- first Linear: numeric part + embedding-folded categorical parts ----
    acc = jnp.dot(
        x_ref[...].astype(compute_dtype), wb_refs[0][...],
        preferred_element_type=jnp.float32,
    )
    for c in range(n_cats):
        vp = fold_refs[c].shape[0]
        iota = lax.broadcasted_iota(jnp.int32, (B, vp), 1)
        # One-hot selection is exact in bf16 (values are 0.0 / 1.0).
        # NOTE: out-of-range indices contribute zeros (nn.Embedding would error).
        onehot = (iota == idx_refs[c][...]).astype(compute_dtype)
        acc += jnp.dot(onehot, fold_refs[c][...], preferred_element_type=jnp.float32)

    h = acc + wb_refs[1][...]                 # f32 bias add (f32 epilogue)
    if n_layers > 1:
        h = jnp.maximum(h, 0.0)               # ReLU; Dropout == identity (eval)

    # ---- remaining Linear (+ReLU) layers, activations never leave VMEM ------
    for l in range(1, n_layers):
        h = jnp.dot(
            h.astype(compute_dtype), wb_refs[2 * l][...],
            preferred_element_type=jnp.float32,
        ) + wb_refs[2 * l + 1][...]
        if l < n_layers - 1:
            h = jnp.maximum(h, 0.0)

    o_ref[...] = h.astype(o_ref.dtype)        # unmasked, lane-dense store


# ---------------------------------------------------------------------------
# TabModel (JAX / Pallas)
# ---------------------------------------------------------------------------
class TabModelPallas:
    def __init__(self, key, dims, cat_dims, cats, nclass, dropout=0.5,
                 param_dtype=jnp.float32, compute_dtype=jnp.bfloat16):
        self.dims = list(dims)
        self.nclass = nclass
        self.cat_dims = cat_dims
        self.cats = dict(cats)
        self.cat_names = list(self.cats.keys())
        self.dropout = dropout            # identity in eval mode
        self.compute_dtype = compute_dtype

        n_hidden = len(dims) - 1
        keys = jax.random.split(key, 2 * (n_hidden + 1) + max(len(self.cats), 1))
        ki = 0

        # Raw (unpadded, f32) parameters — the semantic definition of the model.
        self.hidden = []
        for i in range(n_hidden):
            w = 0.1 * jax.random.normal(keys[ki], (dims[i], dims[i + 1]), param_dtype); ki += 1
            b = 0.1 * jax.random.normal(keys[ki], (dims[i + 1],), param_dtype); ki += 1
            self.hidden.append((w, b))
        self.w_out = 0.1 * jax.random.normal(keys[ki], (dims[-1], nclass), param_dtype); ki += 1
        self.b_out = 0.1 * jax.random.normal(keys[ki], (nclass,), param_dtype); ki += 1
        self.embeds = {}
        for c in self.cat_names:
            self.embeds[c] = jax.random.normal(keys[ki], (self.cats[c], cat_dims), param_dtype); ki += 1

        self._build_kernel_params()

    # -- one-time padding / folding (no per-call jnp.pad / concat) ----------
    def _build_kernel_params(self):
        layers = list(self.hidden) + [(self.w_out, self.b_out)]
        self.n_layers = len(layers)
        self.x_dim = self.dims[0] - len(self.cat_names) * self.cat_dims

        w0, b0 = layers[0]
        n0p = _round_up(w0.shape[1], LANE)

        # Numeric-feature slice of the first Linear (lane-padded on N only).
        w0x = jnp.zeros((self.x_dim, n0p), self.compute_dtype)
        w0x = w0x.at[:, : w0.shape[1]].set(w0[: self.x_dim].astype(self.compute_dtype))

        # Fold each embedding table through its rows of W0:
        #   (onehot @ T_c) @ W0_slice == onehot @ (T_c @ W0_slice)
        self.folded = []
        off = self.x_dim
        for c in self.cat_names:
            t = self.embeds[c]                                   # (V, cat_dims) f32
            f = t @ w0[off : off + self.cat_dims]                # fold in f32 at init
            vp = _round_up(t.shape[0], SUBLANE)
            fp = jnp.zeros((vp, n0p), self.compute_dtype)
            fp = fp.at[: t.shape[0], : w0.shape[1]].set(f.astype(self.compute_dtype))
            self.folded.append(fp)
            off += self.cat_dims

        # Remaining layers: pad K to the previous layer's padded N, pad N to 128.
        self.wb_flat = [w0x, _pad_bias(b0, n0p)]
        kp = n0p
        for (w, b) in layers[1:]:
            npad = _round_up(w.shape[1], LANE)
            wp = jnp.zeros((kp, npad), self.compute_dtype)
            wp = wp.at[: w.shape[0], : w.shape[1]].set(w.astype(self.compute_dtype))
            self.wb_flat += [wp, _pad_bias(b, npad)]
            kp = npad
        self.out_pad = kp                   # padded logits width (lane-dense output)

    # -- forward -------------------------------------------------------------
    def __call__(self, x, cat):
        B = x.shape[0]
        idx = [cat[c].astype(jnp.int32).reshape(B, 1) for c in self.cat_names]
        args = [x] + idx + list(self.folded) + list(self.wb_flat)

        kernel = functools.partial(
            _fused_tabmlp_kernel,
            n_cats=len(self.cat_names),
            n_layers=self.n_layers,
            compute_dtype=self.compute_dtype,
        )

        flops = 2 * B * sum(w.shape[0] * w.shape[1] for w in self.wb_flat[::2])
        flops += 2 * B * sum(f.shape[0] * f.shape[1] for f in self.folded)
        bytes_acc = sum(int(a.size) * a.dtype.itemsize for a in args) + B * self.out_pad * 4

        out = pl.pallas_call(
            kernel,
            out_shape=jax.ShapeDtypeStruct((B, self.out_pad), jnp.float32),
            in_specs=[pl.BlockSpec(a.shape, lambda: (0, 0)) for a in args],
            out_specs=pl.BlockSpec((B, self.out_pad), lambda: (0, 0)),
            cost_estimate=pl.CostEstimate(
                flops=int(flops), transcendentals=0, bytes_accessed=int(bytes_acc)),
        )(*args)

        return out[:, : self.nclass]        # single slice at the very end


# ---------------------------------------------------------------------------
# References for correctness checking
# ---------------------------------------------------------------------------
def _reference_f32(model, x, cat):
    """Pure-f32 semantic reference (matches the PyTorch module)."""
    embs = [model.embeds[c][cat[c]] for c in model.cat_names]
    h = jnp.concatenate([x] + embs, axis=-1) if embs else x
    for (w, b) in model.hidden:
        h = jnp.maximum(h @ w + b, 0.0)
    return h @ model.w_out + model.b_out


def _reference_mirror(model, x, cat):
    """jnp mirror of the kernel math (same bf16 folded params, same op order)."""
    cd = model.compute_dtype
    acc = jnp.dot(x.astype(cd), model.wb_flat[0], preferred_element_type=jnp.float32)
    for ci, c in enumerate(model.cat_names):
        f = model.folded[ci]
        onehot = jax.nn.one_hot(cat[c], f.shape[0], dtype=cd)
        acc += jnp.dot(onehot, f, preferred_element_type=jnp.float32)
    h = acc + model.wb_flat[1]
    if model.n_layers > 1:
        h = jnp.maximum(h, 0.0)
    for l in range(1, model.n_layers):
        h = jnp.dot(h.astype(cd), model.wb_flat[2 * l],
                    preferred_element_type=jnp.float32) + model.wb_flat[2 * l + 1]
        if l < model.n_layers - 1:
            h = jnp.maximum(h, 0.0)
    return h[:, : model.nclass]


if __name__ == "__main__":
    key = jax.random.PRNGKey(0)
    k_model, k_x, k_c0, k_c1 = jax.random.split(key, 4)

    # Small shapes consistent with the module.
    cats = {"c0": 16, "c1": 12}                      # two categorical features
    cat_dims = 8
    x_dim = 32
    dims = [x_dim + len(cats) * cat_dims, 64, 32]    # 48 -> 64 -> 32
    nclass = 4
    B = 8

    model = TabModelPallas(k_model, dims, cat_dims, cats, nclass)

    x = jax.random.normal(k_x, (B, x_dim), jnp.float32)
    cat = {
        "c0": jax.random.randint(k_c0, (B,), 0, cats["c0"]),
        "c1": jax.random.randint(k_c1, (B,), 0, cats["c1"]),
    }

    out = model(x, cat)
    out = jax.block_until_ready(out)
    assert out.shape == (B, nclass), (out.shape, (B, nclass))

    # Exact-math mirror (same bf16 params / op order): tight check of the kernel.
    mirror = _reference_mirror(model, x, cat)
    assert jnp.allclose(out, mirror, atol=1e-2, rtol=1e-2), "mismatch vs bf16 mirror reference"

    # Full-f32 semantic reference: loose check (covers bf16 operand rounding).
    ref = _reference_f32(model, x, cat)
    assert jnp.allclose(out, ref, atol=1e-1, rtol=1e-1), "mismatch vs f32 semantic reference"

    print("KERNEL_OK")
</pallas_src>

<mosaic_0001>
module attributes {stable_mosaic.version = 11 : i64} {
  func.func @_fused_tabmlp_kernel(%arg0: memref<8x32xf32, #tpu.memory_space<vmem>>, %arg1: memref<8x1xi32, #tpu.memory_space<vmem>>, %arg2: memref<8x1xi32, #tpu.memory_space<vmem>>, %arg3: memref<16x128xbf16, #tpu.memory_space<vmem>>, %arg4: memref<16x128xbf16, #tpu.memory_space<vmem>>, %arg5: memref<32x128xbf16, #tpu.memory_space<vmem>>, %arg6: memref<1x128xf32, #tpu.memory_space<vmem>>, %arg7: memref<128x128xbf16, #tpu.memory_space<vmem>>, %arg8: memref<1x128xf32, #tpu.memory_space<vmem>>, %arg9: memref<128x128xbf16, #tpu.memory_space<vmem>>, %arg10: memref<1x128xf32, #tpu.memory_space<vmem>>, %arg11: memref<8x128xf32, #tpu.memory_space<vmem>>) attributes {dimension_semantics = [], scalar_prefetch = 0 : i64, scratch_operands = 0 : i64, tpu.core_type = #tpu.core_type<tc>} {
    %c0 = arith.constant 0 : index
    %c0_0 = arith.constant 0 : index
    %0 = vector.load %arg0[%c0, %c0_0] : memref<8x32xf32, #tpu.memory_space<vmem>>, vector<8x32xf32>
    %1 = arith.truncf %0 : vector<8x32xf32> to vector<8x32xbf16>
    %c0_1 = arith.constant 0 : index
    %c0_2 = arith.constant 0 : index
    %2 = vector.load %arg5[%c0_1, %c0_2] : memref<32x128xbf16, #tpu.memory_space<vmem>>, vector<32x128xbf16>
    %cst = arith.constant dense<0.000000e+00> : vector<8x128xf32>
    %3 = tpu.matmul %1, %2, %cst {dimension_numbers = #tpu.dot_dimension_numbers<[1], [0], [0], [1], [0, 0, 1, 1], [], []>} : vector<8x32xbf16>, vector<32x128xbf16>, vector<8x128xf32> -> vector<8x128xf32>
    %4 = tpu.iota {dimensions = array<i32: 1>} : vector<8x16xi32>
    %c0_3 = arith.constant 0 : index
    %c0_4 = arith.constant 0 : index
    %5 = vector.load %arg1[%c0_3, %c0_4] : memref<8x1xi32, #tpu.memory_space<vmem>>, vector<8x1xi32>
    %6 = vector.broadcast %5 : vector<8x1xi32> to vector<8x16xi32>
    %7 = arith.cmpi eq, %4, %6 : vector<8x16xi32>
    %8 = arith.extui %7 : vector<8x16xi1> to vector<8x16xi32>
    %9 = arith.sitofp %8 : vector<8x16xi32> to vector<8x16xf32>
    %10 = arith.truncf %9 : vector<8x16xf32> to vector<8x16xbf16>
    %c0_5 = arith.constant 0 : index
    %c0_6 = arith.constant 0 : index
    %11 = vector.load %arg3[%c0_5, %c0_6] : memref<16x128xbf16, #tpu.memory_space<vmem>>, vector<16x128xbf16>
    %cst_7 = arith.constant dense<0.000000e+00> : vector<8x128xf32>
    %12 = tpu.matmul %10, %11, %cst_7 {dimension_numbers = #tpu.dot_dimension_numbers<[1], [0], [0], [1], [0, 0, 1, 1], [], []>} : vector<8x16xbf16>, vector<16x128xbf16>, vector<8x128xf32> -> vector<8x128xf32>
    %13 = arith.addf %3, %12 : vector<8x128xf32>
    %14 = tpu.iota {dimensions = array<i32: 1>} : vector<8x16xi32>
    %c0_8 = arith.constant 0 : index
    %c0_9 = arith.constant 0 : index
    %15 = vector.load %arg2[%c0_8, %c0_9] : memref<8x1xi32, #tpu.memory_space<vmem>>, vector<8x1xi32>
    %16 = vector.broadcast %15 : vector<8x1xi32> to vector<8x16xi32>
    %17 = arith.cmpi eq, %14, %16 : vector<8x16xi32>
    %18 = arith.extui %17 : vector<8x16xi1> to vector<8x16xi32>
    %19 = arith.sitofp %18 : vector<8x16xi32> to vector<8x16xf32>
    %20 = arith.truncf %19 : vector<8x16xf32> to vector<8x16xbf16>
    %c0_10 = arith.constant 0 : index
    %c0_11 = arith.constant 0 : index
    %21 = vector.load %arg4[%c0_10, %c0_11] : memref<16x128xbf16, #tpu.memory_space<vmem>>, vector<16x128xbf16>
    %cst_12 = arith.constant dense<0.000000e+00> : vector<8x128xf32>
    %22 = tpu.matmul %20, %21, %cst_12 {dimension_numbers = #tpu.dot_dimension_numbers<[1], [0], [0], [1], [0, 0, 1, 1], [], []>} : vector<8x16xbf16>, vector<16x128xbf16>, vector<8x128xf32> -> vector<8x128xf32>
    %23 = arith.addf %13, %22 : vector<8x128xf32>
    %c0_13 = arith.constant 0 : index
    %c0_14 = arith.constant 0 : index
    %24 = vector.load %arg6[%c0_13, %c0_14] : memref<1x128xf32, #tpu.memory_space<vmem>>, vector<1x128xf32>
    %25 = vector.broadcast %24 : vector<1x128xf32> to vector<8x128xf32>
    %26 = arith.addf %23, %25 : vector<8x128xf32>
    %cst_15 = arith.constant 0.000000e+00 : f32
    %27 = vector.broadcast %cst_15 : f32 to vector<8x128xf32>
    %28 = arith.maximumf %26, %27 : vector<8x128xf32>
    %29 = arith.truncf %28 : vector<8x128xf32> to vector<8x128xbf16>
    %c0_16 = arith.constant 0 : index
    %c0_17 = arith.constant 0 : index
    %30 = vector.load %arg7[%c0_16, %c0_17] : memref<128x128xbf16, #tpu.memory_space<vmem>>, vector<128x128xbf16>
    %cst_18 = arith.constant dense<0.000000e+00> : vector<8x128xf32>
    %31 = tpu.matmul %29, %30, %cst_18 {dimension_numbers = #tpu.dot_dimension_numbers<[1], [0], [0], [1], [0, 0, 1, 1], [], []>} : vector<8x128xbf16>, vector<128x128xbf16>, vector<8x128xf32> -> vector<8x128xf32>
    %c0_19 = arith.constant 0 : index
    %c0_20 = arith.constant 0 : index
    %32 = vector.load %arg8[%c0_19, %c0_20] : memref<1x128xf32, #tpu.memory_space<vmem>>, vector<1x128xf32>
    %33 = vector.broadcast %32 : vector<1x128xf32> to vector<8x128xf32>
    %34 = arith.addf %31, %33 : vector<8x128xf32>
    %cst_21 = arith.constant 0.000000e+00 : f32
    %35 = vector.broadcast %cst_21 : f32 to vector<8x128xf32>
    %36 = arith.maximumf %34, %35 : vector<8x128xf32>
    %37 = arith.truncf %36 : vector<8x128xf32> to vector<8x128xbf16>
    %c0_22 = arith.constant 0 : index
    %c0_23 = arith.constant 0 : index
    %38 = vector.load %arg9[%c0_22, %c0_23] : memref<128x128xbf16, #tpu.memory_space<vmem>>, vector<128x128xbf16>
    %cst_24 = arith.constant dense<0.000000e+00> : vector<8x128xf32>
    %39 = tpu.matmul %37, %38, %cst_24 {dimension_numbers = #tpu.dot_dimension_numbers<[1], [0], [0], [1], [0, 0, 1, 1], [], []>} : vector<8x128xbf16>, vector<128x128xbf16>, vector<8x128xf32> -> vector<8x128xf32>
    %c0_25 = arith.constant 0 : index
    %c0_26 = arith.constant 0 : index
    %40 = vector.load %arg10[%c0_25, %c0_26] : memref<1x128xf32, #tpu.memory_space<vmem>>, vector<1x128xf32>
    %41 = vector.broadcast %40 : vector<1x128xf32> to vector<8x128xf32>
    %42 = arith.addf %39, %41 : vector<8x128xf32>
    %c0_27 = arith.constant 0 : index
    %c0_28 = arith.constant 0 : index
    %43 = vector.load %arg11[%c0_27, %c0_28] : memref<8x128xf32, #tpu.memory_space<vmem>>, vector<8x128xf32>
    tpu.vector_store %arg11[%c0_27, %c0_28], %42 {strides = array<i32>} : memref<8x128xf32, #tpu.memory_space<vmem>>, vector<8x128xf32>,
    return
  }
}

</mosaic_0001>

<bundles_post_ra>
// kernel: tpu_custom_call.1
= control target key start
LH: loop header
LB: loop body
LE: loop exit
PB: predicated region body
PF: predicated region fallthrough
CT: control target
= control target key end

     0   :  { %16 = vsyncpa [#allocation3], 0  ;;  %s945_s0 = inlined_call_operand.vmem [shape: f32[8,32], index: 0, kind: input, shape index: {}]   ;;  %s946_s1 = inlined_call_operand.vmem [shape: s32[8,1], index: 1, kind: input, shape index: {}]   ;;  %s947_s2 = inlined_call_operand.vmem [shape: s32[8,1], index: 2, kind: input, shape index: {}]   ;;  %s948_s3 = inlined_call_operand.vmem [shape: bf16[16,128], index: 3, kind: input, shape index: {}]   ;;  %s949_s4 = inlined_call_operand.hbm [shape: bf16[16,128], index: 4, kind: input, shape index: {}]   ;;  %s950_s5 = inlined_call_operand.vmem [shape: bf16[32,128], index: 5, kind: input, shape index: {}]   ;;  %s951_s6 = inlined_call_operand.vmem [shape: f32[1,128], index: 6, kind: input, shape index: {}]   ;;  %s952_s7 = inlined_call_operand.hbm [shape: bf16[128,128], index: 7, kind: input, shape index: {}]   ;;  %s953_s8 = inlined_call_operand.vmem [shape: f32[1,128], index: 8, kind: input, shape index: {}]   ;;  %s954_s9 = inlined_call_operand.hbm [shape: bf16[128,128], index: 9, kind: input, shape index: {}]   ;;  %s955_s10 = inlined_call_operand.vmem [shape: f32[1,128], index: 10, kind: input, shape index: {}]   ;;  %s956_s11 = inlined_call_operand.hbm [shape: f32[8,128], index: 11, kind: output, shape index: {}]  }
   0x1   :  { %17 = vsyncpa [#allocation6], 0 }
   0x2   :  { %18 = vsyncpa [#allocation4], 0  ;;  %s753_s17 = smov [#allocation5]   ;;  %s754_s19 = smov [#allocation2]  }
   0x3   :  { %s48_s18 = sshll.u32 %s753_s17, 4  ;;  %s32_s20 = sshll.u32 %s754_s19, 4  ;;  %s49_s18 = int_to_ptr.vmem [resolvable:$true] %s48_s18  ;;  %s822_s20 = int_to_ptr.vmem [resolvable:$true] %s32_s20 }
   0x4   :  { %s659_s23 = scalar_lea.hbm %s952_s7, 1024 }
   0x5   :  { %p660_p0 = scmp.ne.s32.totalorder %s952_s7, %s659_s23  ;;  %p663_p1 = scmp.lt.u32.totalorder %s659_s23, %s952_s7 }
   0x7   :  { %p665_p2 = pnand %p663_p1, %p660_p0 }
   0x9   :  { %668 = shalt.err (!%p665_p2)
}
   0xa   :  { %s669_s28 = scalar_lea.vmem %s49_s18, 1024  ;;  %p674_p4 = scmp.lt.s32.totalorder %s49_s18, %s49_s18 }
   0xb   :  { %p670_p3 = scmp.ne.s32.totalorder %s49_s18, %s669_s28  ;;  %p675_p5 = scmp.lt.s32.totalorder %s669_s28, %s669_s28 }
   0xd   :  { %p676_p6 = por %p675_p5, %p674_p4 }
   0xf   :  { %p677_p7 = pnand %p676_p6, %p670_p3 }
  0x11   :  { %680 = shalt.err (!%p677_p7)
}
  0x12   :  { %s755_s29 = smov 64   ;;  %s756_s30 = smov 4  }
  0x13   :  { %54 = dma.hbm_to_vmem [thread:$0]  %s952_s7, 1024, %s49_s18, [#allocation6], %s755_s29, %s755_s29, %s756_s30  }
  0x14   :  { %s681_s16 = scalar_lea.hbm %s949_s4, 128 }
  0x15   :  { %p682_p8 = scmp.ne.s32.totalorder %s949_s4, %s681_s16  ;;  %p685_p9 = scmp.lt.u32.totalorder %s681_s16, %s949_s4 }
  0x17   :  { %p687_p10 = pnand %p685_p9, %p682_p8 }
  0x19   :  { %690 = shalt.err (!%p687_p10)
}
  0x1a   :  { %s691_s23 = scalar_lea.vmem %s822_s20, 128  ;;  %p696_p12 = scmp.lt.s32.totalorder %s822_s20, %s822_s20 }
  0x1b   :  { %p692_p11 = scmp.ne.s32.totalorder %s822_s20, %s691_s23  ;;  %p697_p13 = scmp.lt.s32.totalorder %s691_s23, %s691_s23 }
  0x1d   :  { %p698_p0 = por %p697_p13, %p696_p12 }
  0x1f   :  { %p699_p1 = pnand %p698_p0, %p692_p11 }
  0x21   :  { %702 = shalt.err (!%p699_p1)
}
  0x22   :  { %38 = dma.hbm_to_vmem [thread:$0]  %s949_s4, 128, %s822_s20, [#allocation3], %s755_s29, %s755_s29, %s756_s30  }
  0x23   :  { %s757_s24 = smov [#allocation7]   ;;  %s703_s28 = scalar_lea.hbm %s954_s9, 1024 }
  0x24   :  { %s62_s25 = sshll.u32 %s757_s24, 4  ;;  %p704_p2 = scmp.ne.s32.totalorder %s954_s9, %s703_s28  ;;  %s63_s25 = int_to_ptr.vmem [resolvable:$true] %s62_s25 }
  0x25   :  { %p707_p3 = scmp.lt.u32.totalorder %s703_s28, %s954_s9 }
  0x27   :  { %p709_p4 = pnand %p707_p3, %p704_p2 }
  0x29   :  { %712 = shalt.err (!%p709_p4)
}
  0x2a   :  { %s713_s16 = scalar_lea.vmem %s63_s25, 1024  ;;  %p718_p6 = scmp.lt.s32.totalorder %s63_s25, %s63_s25 }
  0x2b   :  { %p714_p5 = scmp.ne.s32.totalorder %s63_s25, %s713_s16  ;;  %p719_p7 = scmp.lt.s32.totalorder %s713_s16, %s713_s16 }
  0x2d   :  { %p720_p8 = por %p719_p7, %p718_p6 }
  0x2f   :  { %p721_p9 = pnand %p720_p8, %p714_p5 }
  0x31   :  { %724 = shalt.err (!%p721_p9)
}
  0x32   :  { %68 = dma.hbm_to_vmem [thread:$0]  %s954_s9, 1024, %s63_s25, [#allocation6], %s755_s29, %s755_s29, %s756_s30  }
  0x33   :  { %747 = dma.done.wait [#allocation3], 128  }
  0x34   :  { %748 = vsyncadd [#allocation3], 4294967168 }
  0x35   :  { %749 = dma.done.wait [#allocation6], 2048  }
  0x36   :  { %750 = vsyncadd [#allocation6], 4294965248  ;;  %v758_v0 = vmov 0   ;;  %v759_v1 = vmov 0.0   ;;  %v89_v2 = vld [vmem:[%s946_s1] sm:$0xff]  ;;  %v641_v6 = vld [vmem:[%s950_s5 + $0x8] sm:$0xff]   ;;  %v87_v13 = vlaneseq }
  0x37   :  { %638 = vset.pattern.permute.xlu0 %v758_v0  ;;  %575 = vmatprep.subr.bf16.mxu1 %v759_v1  ;;  %v205_v3 = vld [vmem:[%s947_s2] sm:$0xff]  ;;  %vm760_vm0 = vmmov 0   ;;  %vm161_vm1 = vcmask 261120   ;;  %v643_v9 = vld [vmem:[#allocation5] sm:$0xff]   ;;  %v644_v10 = vld [vmem:[#allocation5 + $0x8] sm:$0xff]   ;;  %vm105_vm3 = vcmask 130048  }
  0x38   :  { %569 = vmatprep.subr.bf16.mxu0 %v759_v1  ;;  %91 = vperm.xlu0 %638, %v89_v2   ;;  %v639_v4 = vld [vmem:[%s950_s5] sm:$0xff]   ;;  %v645_v11 = vld [vmem:[#allocation5 + $0x10] sm:$0xff]   ;;  %v88_v14 = vand.u32 127, %v87_v13  ;;  %v647_v22 = vld [vmem:[#allocation5 + $0x20] sm:$0xff]   ;;  %s761_s26 = smov [#allocation8]  }
  0x39   :  { %v640_v5 = vld [vmem:[%s948_s3] sm:$0xff]   ;;  %576 = vmatpush3.bf16.msra.mxu1 %v639_v4  ;;  %571 = vmatprep.mubr.msk.bf16.mxu0 %vm760_vm0, %v759_v1  ;;  %v648_v23 = vld [vmem:[#allocation5 + $0x28] sm:$0xff]   ;;  %v649_v28 = vld [vmem:[#allocation5 + $0x30] sm:$0xff]   ;;  %s506_s27 = sshll.u32 %s761_s26, 4  ;;  %s507_s27 = int_to_ptr.vmem [resolvable:$true] %s506_s27 }
  0x3a   :  { %v81_v7 = vld [vmem:[%s945_s0] sm:$0xff]  ;;  %570 = vmatpush3.bf16.msra.mxu0 %v640_v5  ;;  %577 = vmatprep.subr.bf16.mxu1 %v759_v1  ;;  %v651_v30 = vld [vmem:[#allocation7] sm:$0xff]   ;;  %v652_v31 = vld [vmem:[#allocation7 + $0x8] sm:$0xff]   ;;  %p730_p11 = scmp.lt.s32.totalorder %s507_s27, %s507_s27 }
  0x3b   :  { %579 = vmatprep.mubr.msk.bf16.mxu1 %vm760_vm0, %v759_v1  ;;  %583 = vmatprep.subr.bf16.mxu0 %v759_v1  ;;  %v82_v8 = vpack.c.bf16 %v81_v7, %v81_v7  ;;  %v646_v12 = vld [vmem:[#allocation5 + $0x18] sm:$0xff]   ;;  %v653_v32 = vld [vmem:[#allocation7 + $0x10] sm:$0xff]   ;;  %v655_v34 = vld [vmem:[#allocation7 + $0x20] sm:$0xff]  }
  0x3c   :  { %207 = vperm.xlu0 %638, %v205_v3   ;;  %v642_v17 = vld [vmem:[#allocation2] sm:$0xff]   ;;  %v656_v35 = vld [vmem:[#allocation7 + $0x28] sm:$0xff]   ;;  %v657_v50 = vld [vmem:[#allocation7 + $0x30] sm:$0xff]  }
  0x3d   :  { %578 = vmatpush3.bf16.msra.mxu1 %v641_v6  ;;  %v650_v29 = vld [vmem:[#allocation5 + $0x38] sm:$0xff]  }
  0x3e   :  { %589 = vmatprep.subr.bf16.mxu1 %v759_v1  ;;  %v654_v33 = vld [vmem:[#allocation7 + $0x18] sm:$0xff]  }
  0x3f   :  { %v525_v42 = vld [vmem:[%s951_s6] ss:$0 sm:$0xff] }
  0x40   :  { %580 = vmatmul.mubr.msk.bf16.vlgmr.msra.gmra.mrb[0].mxu1 %vm161_vm1, %v82_v8  ;;  %v658_v51 = vld [vmem:[#allocation7 + $0x38] sm:$0xff]  }
  0x41   :  { %605 = vmatprep.mubr.msk.bf16.mxu1 %vm760_vm0, %v759_v1  ;;  %590 = vmatpush3.bf16.msra.mxu1 %v643_v9  ;;  %v526_v52 = vld [vmem:[%s953_s8] ss:$0 sm:$0xff]  ;;  %s725_s8 = scalar_lea.vmem %s507_s27, 128 }
  0x42   :  { %591 = vmatprep.subr.bf16.mxu1 %v759_v1  ;;  %v535_v60 = vld [vmem:[%s955_s10] ss:$0 sm:$0xff]  ;;  %p726_p10 = scmp.ne.s32.totalorder %s507_s27, %s725_s8  ;;  %p731_p12 = scmp.lt.s32.totalorder %s725_s8, %s725_s8 }
  0x44   :  { %p732_p13 = por %p731_p12, %p730_p11 }
  0x45   :  { %592 = vmatpush3.bf16.msra.mxu1 %v644_v10 }
  0x46   :  { %593 = vmatprep.subr.bf16.mxu1 %v759_v1  ;;  %p733_p0 = pnand %p732_p13, %p726_p10 }
  0x49   :  { %594 = vmatpush3.bf16.msra.mxu1 %v645_v11 }
  0x4a   :  { %595 = vmatprep.subr.bf16.mxu1 %v759_v1 }
  0x4d   :  { %596 = vmatpush3.bf16.msra.mxu1 %v646_v12 }
  0x4e   :  { %597 = vmatprep.subr.bf16.mxu1 %v759_v1 }
  0x51   :  { %598 = vmatpush3.bf16.msra.mxu1 %v647_v22 }
  0x52   :  { %599 = vmatprep.subr.bf16.mxu1 %v759_v1 }
  0x55   :  { %600 = vmatpush3.bf16.msra.mxu1 %v648_v23 }
  0x56   :  { %601 = vmatprep.subr.bf16.mxu1 %v759_v1 }
  0x59   :  { %602 = vmatpush3.bf16.msra.mxu1 %v649_v28 }
  0x5a   :  { %603 = vmatprep.subr.bf16.mxu1 %v759_v1 }
  0x5d   :  { %604 = vmatpush3.bf16.msra.mxu1 %v650_v29 }
  0xb7   :  { %v92_v15 = vpop.permute.xlu0 %91 }
  0xb8   :  { %vm93_vm2 = vcmp.eq.s32.totalorder %v88_v14, %v92_v15 }
  0xb9   :  { %v516_v16 = vsel %vm93_vm2, 1.0, %v759_v1 }
  0xba   :  { %v96_v18 = vpack.c.bf16 %v516_v16, %v516_v16 }
  0xbb   :  { %v208_v19 = vpop.permute.xlu0 %207 }
  0xbc   :  { %vm209_vm4 = vcmp.eq.s32.totalorder %v88_v14, %v208_v19  ;;  %572 = vmatmul.mubr.msk.bf16.vlgmr.msra.gmra.mrb[0].mxu0 %vm105_vm3, %v96_v18 }
  0xbd   :  { %584 = vmatpush3.bf16.msra.mxu0 %v642_v17  ;;  %585 = vmatprep.mubr.msk.bf16.mxu0 %vm760_vm0, %v759_v1  ;;  %v522_v20 = vsel %vm209_vm4, 1.0, %v759_v1 }
  0xbe   :  { %609 = vmatprep.subr.bf16.mxu0 %v759_v1  ;;  %v212_v21 = vpack.c.bf16 %v522_v20, %v522_v20 }
  0xc4   :  { %586 = vmatmul.mubr.msk.bf16.vlgmr.msra.gmra.mrb[4].mxu0 %vm105_vm3, %v212_v21 }
  0xc5   :  { %625 = vmatprep.mubr.msk.bf16.mxu0 %vm760_vm0, %v759_v1  ;;  %610 = vmatpush3.bf16.msra.mxu0 %v651_v30 }
  0xc6   :  { %611 = vmatprep.subr.bf16.mxu0 %v759_v1 }
  0xc9   :  { %612 = vmatpush3.bf16.msra.mxu0 %v652_v31 }
  0xca   :  { %613 = vmatprep.subr.bf16.mxu0 %v759_v1 }
  0xcd   :  { %614 = vmatpush3.bf16.msra.mxu0 %v653_v32 }
  0xce   :  { %615 = vmatprep.subr.bf16.mxu0 %v759_v1 }
  0xd1   :  { %616 = vmatpush3.bf16.msra.mxu0 %v654_v33 }
  0xd2   :  { %617 = vmatprep.subr.bf16.mxu0 %v759_v1 }
  0xd5   :  { %618 = vmatpush3.bf16.msra.mxu0 %v655_v34 }
  0xd6   :  { %619 = vmatprep.subr.bf16.mxu0 %v759_v1 }
  0xd9   :  { %620 = vmatpush3.bf16.msra.mxu0 %v656_v35 }
  0xda   :  { %621 = vmatprep.subr.bf16.mxu0 %v759_v1 }
  0xdd   :  { %622 = vmatpush3.bf16.msra.mxu0 %v657_v50 }
  0xde   :  { %623 = vmatprep.subr.bf16.mxu0 %v759_v1 }
  0xe1   :  { %624 = vmatpush3.bf16.msra.mxu0 %v658_v51 }
 0x113   :  { %v199_v24 = vpop.f32.mrb[0].mxu1 }
 0x114   :  { %v581_v25 = vpop.f32.mrb[1].mxu1 }
 0x115   :  { %v202_v26 = vpop.f32.mrb[2].mxu1 }
 0x116   :  { %v582_v27 = vpop.f32.mrb[3].mxu1 }
 0x18f   :  { %v143_v36 = vpop.f32.mrb[0].mxu0 }
 0x190   :  { %v200_v37 = vadd.f32 %v199_v24, %v143_v36  ;;  %v573_v38 = vpop.f32.mrb[1].mxu0 }
 0x191   :  { %v146_v39 = vpop.f32.mrb[2].mxu0 }
 0x192   :  { %v574_v40 = vpop.f32.mrb[3].mxu0 }
 0x197   :  { %v258_v41 = vpop.f32.mrb[4].mxu0 }
 0x198   :  { %v264_v43 = vadd.f32 %v258_v41, %v200_v37  ;;  %v587_v44 = vpop.f32.mrb[5].mxu0 }
 0x199   :  { %v261_v45 = vpop.f32.mrb[6].mxu0 }
 0x19a   :  { %v272_v46 = vadd.f32 %v525_v42, %v264_v43  ;;  %v588_v47 = vpop.f32.mrb[7].mxu0 }
 0x19c   :  { %v273_v48 = vmax.f32 %v272_v46, 0.0 }
 0x19e   :  { %v274_v49 = vpack.c.bf16 %v273_v48, %v273_v48 }
 0x1a0   :  { %606 = vmatmul.mubr.bf16.vlgmr.msra.gmra.mrb[4].mxu1 %v274_v49 }
 0x273   :  { %v380_v53 = vpop.f32.mrb[4].mxu1 }
 0x274   :  { %v381_v54 = vadd.f32 %v526_v52, %v380_v53  ;;  %v607_v55 = vpop.f32.mrb[5].mxu1 }
 0x275   :  { %v383_v56 = vpop.f32.mrb[6].mxu1 }
 0x276   :  { %v386_v57 = vmax.f32 %v381_v54, 0.0  ;;  %v608_v58 = vpop.f32.mrb[7].mxu1 }
 0x278   :  { %v387_v59 = vpack.c.bf16 %v386_v57, %v386_v57 }
 0x27a   :  { %626 = vmatmul.mubr.bf16.vlgmr.msra.gmra.mrb[8].mxu0 %v387_v59 }
 0x34d   :  { %v493_v61 = vpop.f32.mrb[8].mxu0 }
 0x34e   :  { %v494_v62 = vadd.f32 %v535_v60, %v493_v61  ;;  %v627_v63 = vpop.f32.mrb[9].mxu0 }
 0x34f   :  { %v496_v0 = vpop.f32.mrb[10].mxu0 }
 0x350   :  { %499 = vst [vmem:[#allocation8] sm:$0xff] %v494_v62  ;;  %v628_v1 = vpop.f32.mrb[11].mxu0 }
 0x351   :  { %736 = shalt.err (!%p733_p0)
}
 0x352   :  { %s737_s10 = scalar_lea.hbm %s956_s11, 128 }
 0x353   :  { %p738_p1 = scmp.ne.s32.totalorder %s956_s11, %s737_s10  ;;  %p741_p2 = scmp.lt.u32.totalorder %s737_s10, %s956_s11 }
 0x355   :  { %p743_p3 = pnand %p741_p2, %p738_p1 }
 0x357   :  { %746 = shalt.err (!%p743_p3)
}
 0x358   :  { %509 = dma.vmem_to_hbm [thread:$0]  %s507_s27, 128, %s956_s11, [#allocation4]  }
 0x359   :  { %751 = dma.done.wait [#allocation4], 128  }
 0x35a   :  { %752 = vsyncadd [#allocation4], 4294967168 }
 0x35b   :  { %513 = vsyncpa [#allocation3], 1 }
 0x35c   :  { %514 = vsyncpa [#allocation6], 1 }
 0x35d   :  { %515 = vsyncpa [#allocation4], 1 }

</bundles_post_ra>
